<compile_context>
chip_gen: v7x
topology: tpu7x:2x2x1
jax: 0.10.0
libtpu: 0.0.40
codegen_flags: <defaults>
</compile_context>

<pallas_src>
import math

import jax
import jax.numpy as jnp
from jax.experimental import pallas as pl
from jax.experimental.pallas import tpu as pltpu


def _cdiv(a: int, b: int) -> int:
    return -(-a // b)


def _round_up(a: int, b: int) -> int:
    return _cdiv(a, b) * b


def _build_pe(max_len: int, d_model: int) -> jnp.ndarray:
    """Replicates the PyTorch buffer construction (shape (1, max_len**2, d_model)), f32."""
    ml = max_len ** 2
    position = jnp.arange(0, ml, dtype=jnp.float32)[:, None]            # (ml, 1)
    div_term = jnp.exp(
        jnp.arange(0, d_model, 2, dtype=jnp.float32) * (-math.log(10000.0) / d_model)
    )                                                                    # (ceil(d/2),)
    angles = position * div_term                                         # (ml, ceil(d/2))
    pe = jnp.zeros((ml, d_model), dtype=jnp.float32)
    pe = pe.at[:, 0::2].set(jnp.sin(angles))
    pe = pe.at[:, 1::2].set(jnp.cos(angles)[:, : pe[:, 1::2].shape[1]])
    return pe[None, :, :]                                                # (1, ml, d_model)


def _pe_add_kernel(x_ref, pe_ref, o_ref):
    # x_ref/o_ref: (B, T) block in x.dtype; pe_ref: (1, T) block in float32.
    # pe is DMA'd once per position tile and broadcast over the batch sublanes in-register.
    # Add in f32 (faithful to the PyTorch f32 pe buffer); cast only the output tile.
    x = x_ref[...].astype(jnp.float32)
    o_ref[...] = (x + pe_ref[...]).astype(o_ref.dtype)


def _pick_tile(N: int, t_budget: int) -> tuple[int, bool]:
    """Pick a lane-tile width T.

    Returns (T, ragged). T is a multiple of 128 that divides N whenever N % 128 == 0
    (no ragged edge tile), capped so that (a) it fits the VMEM budget and (b) the grid
    has ~8 tiles of >= 1024 lanes for pipelining / megacore sharding on large inputs.
    """
    if N % 128 != 0:
        if N <= t_budget:
            return N, False           # single full-width tile (block == full dim is legal)
        # Rare: large N that is not a multiple of 128 -> ragged edge tile.
        # Output edge columns are masked by Pallas, so this stays correct.
        return t_budget, True
    # Aim for ~8 tiles, but keep each tile >= 1024 lanes and within the VMEM budget.
    cap = min(t_budget, max(1024, _round_up(_cdiv(N, 8), 128)))
    cap = min(cap, N)
    m = N // 128
    k = cap // 128                    # >= 1
    while m % k != 0:
        k -= 1                        # terminates at k == 1 (T = 128 always divides N here)
    return 128 * k, False


def positional_encoding_forward(
    x: jnp.ndarray,
    pe: jnp.ndarray,
    dropout_p: float = 0.0,
    *,
    block_budget_bytes: int = 8 << 20,   # total VMEM across double-buffered blocks (all gens)
    donate_x: bool = False,              # alias x's buffer for the output (pair with jit donation)
) -> jnp.ndarray:
    """x: (B, S, D); pe: (1, max_len**2, D) float32. Returns x + pe[:, :S] in x.dtype."""
    if dropout_p != 0.0:
        # TODO(synk): implement dropout (p > 0) with pltpu.prng_seed / prng_random_bits.
        raise NotImplementedError("dropout_p > 0 not implemented; module default is 0.0")

    B, S, D = x.shape
    _, ML, Dp = pe.shape
    assert Dp == D, "pe d_model mismatch"
    assert S <= ML, "sequence length exceeds the positional-encoding table"

    N = S * D                                   # flattened per-batch payload
    itemsize = jnp.dtype(x.dtype).itemsize
    pe_itemsize = jnp.dtype(pe.dtype).itemsize

    # Free, contiguous reshape: last dim becomes lane-dense.
    x2 = x.reshape(B, N)

    # --- tile-size selection (bounded VMEM on v5e/v6e/v7x) -------------------------
    # Per flattened column, VMEM cost with sublane padding to 8 and double-buffering:
    # x-in + out blocks at padded_B rows (x dtype) and the pe block at 8 rows (f32).
    padded_B = _round_up(B, 8)
    bytes_per_col = 2 * (2 * padded_B * itemsize + 8 * pe_itemsize)
    t_budget = max(128, (block_budget_bytes // bytes_per_col) // 128 * 128)

    T, ragged = _pick_tile(N, t_budget)
    n_tiles = _cdiv(N, T)

    # --- pe presentation (NO full-table dtype cast on the hot path) ------------------
    if T == N and N % 128 != 0:
        # Degenerate tiny/odd case (single block, N not a multiple of 128): slice pe so the
        # block width equals pe's full width. The copy is N*4 bytes; negligible by construction.
        pe2 = jax.lax.slice(pe, (0, 0, 0), (1, S, D)).reshape(1, N)
    else:
        # Hot path: free reshape of the full table; index_map picks column blocks inside the
        # first N columns. pe stays f32 — the cast happens in-kernel on the (1, T) block only.
        pe2 = pe.reshape(1, ML * D)
    # Note on `ragged`: the x/out edge block has its out-of-range columns masked by Pallas,
    # so any garbage read on the pe edge block lands only in masked output lanes.

    # Explicit scoped-VMEM headroom (stays under v5e's 16 MiB default with the 8 MiB budget;
    # grows intentionally, never past 64 MiB, if the caller bumps the budget on v6e).
    vmem_limit_bytes = int(max(16 << 20, min(2 * block_budget_bytes, 64 << 20)))

    # Advisory cost for XLA's scheduler: read x + pe column, write out. One add per element.
    cost = pl.CostEstimate(
        flops=B * N,
        transcendentals=0,
        bytes_accessed=2 * B * N * itemsize + N * pe_itemsize,
    )

    out2 = pl.pallas_call(
        _pe_add_kernel,
        out_shape=jax.ShapeDtypeStruct((B, N), x.dtype),
        grid_spec=pltpu.PrefetchScalarGridSpec(
            num_scalar_prefetch=0,
            grid=(n_tiles,),
            in_specs=[
                pl.BlockSpec((B, T), lambda t: (0, t)),   # x: all batches, one column tile
                pl.BlockSpec((1, T), lambda t: (0, t)),   # pe: same column tile, read once
            ],
            out_specs=pl.BlockSpec((B, T), lambda t: (0, t)),
        ),
        # Fully-parallel position axis: with n_tiles >= 2 (guaranteed for non-tiny N by
        # _pick_tile), v7x megacore can shard tiles across both TensorCores.
        compiler_params=pltpu.CompilerParams(
            dimension_semantics=("parallel",),
            vmem_limit_bytes=vmem_limit_bytes,
        ),
        cost_estimate=cost,
        input_output_aliases=({0: 0} if donate_x else {}),
    )(x2, pe2)

    return out2.reshape(B, S, D)


if __name__ == "__main__":
    # --- primary small config (matches the module's intended use) -------------------
    # max_len=4 -> pe covers 16 positions; d_model=32; batch=2; seq=8.
    max_len, d_model = 4, 32
    B, S = 2, 8

    pe = _build_pe(max_len, d_model)
    key = jax.random.PRNGKey(0)
    x = jax.random.normal(key, (B, S, d_model), dtype=jnp.float32)

    out = positional_encoding_forward(x, pe)
    out = jax.block_until_ready(out)
    ref = x + pe[:, :S]
    assert out.shape == (B, S, d_model)
    assert jnp.allclose(out, ref, atol=1e-6), "mismatch vs reference (primary config)"

    # --- aliased-output path (input_output_aliases={0: 0}) --------------------------
    out_d = positional_encoding_forward(x, pe, donate_x=True)
    out_d = jax.block_until_ready(out_d)
    assert jnp.allclose(out_d, ref, atol=1e-6), "mismatch vs reference (donated config)"

    # --- multi-tile config (exercises divisor tiling, n_tiles > 1, B not mult of 8) --
    ml2, d2, B2, S2 = 8, 128, 3, 17
    pe2 = _build_pe(ml2, d2)
    x2 = jax.random.normal(jax.random.PRNGKey(1), (B2, S2, d2), dtype=jnp.float32)
    out2 = positional_encoding_forward(x2, pe2, block_budget_bytes=64 * 1024)
    out2 = jax.block_until_ready(out2)
    ref2 = x2 + pe2[:, :S2]
    assert jnp.allclose(out2, ref2, atol=1e-6), "mismatch vs reference (multi-tile config)"

    # --- mixed-dtype config (bf16 x, f32 pe: in-kernel f32 add, bf16 output) --------
    x3 = jax.random.normal(jax.random.PRNGKey(3), (B2, S2, d2), dtype=jnp.bfloat16)
    out3 = positional_encoding_forward(x3, pe2, block_budget_bytes=64 * 1024)
    out3 = jax.block_until_ready(out3)
    ref3 = (x3.astype(jnp.float32) + pe2[:, :S2]).astype(jnp.bfloat16)
    assert jnp.allclose(out3.astype(jnp.float32), ref3.astype(jnp.float32), atol=2e-2), \
        "mismatch vs reference (bf16 config)"

    # --- tiny odd config (exercises the single-block pe-slice fallback) -------------
    ml4, d4, B4, S4 = 4, 32, 2, 7
    pe4 = _build_pe(ml4, d4)
    x4 = jax.random.normal(jax.random.PRNGKey(2), (B4, S4, d4), dtype=jnp.float32)
    out4 = positional_encoding_forward(x4, pe4)
    out4 = jax.block_until_ready(out4)
    ref4 = x4 + pe4[:, :S4]
    assert jnp.allclose(out4, ref4, atol=1e-6), "mismatch vs reference (odd config)"

    print("KERNEL_OK")
</pallas_src>

<mosaic_0001>
module attributes {stable_mosaic.version = 11 : i64} {
  func.func @_pe_add_kernel(%arg0: i32, %arg1: memref<2x256xf32, #tpu.memory_space<vmem>>, %arg2: memref<1x256xf32, #tpu.memory_space<vmem>>, %arg3: memref<2x256xf32, #tpu.memory_space<vmem>>) attributes {dimension_semantics = [#tpu.dimension_semantics<parallel>], iteration_bounds = array<i64: 1>, scalar_prefetch = 0 : i64, scratch_operands = 0 : i64, tpu.core_type = #tpu.core_type<tc>, window_params = [{transform_indices = @transform_0, window_bounds = array<i64: 2, 256>}, {transform_indices = @transform_1, window_bounds = array<i64: 1, 256>}, {transform_indices = @transform_2, window_bounds = array<i64: 2, 256>}]} {
    %c0 = arith.constant 0 : index
    %c0_0 = arith.constant 0 : index
    %0 = vector.load %arg1[%c0, %c0_0] : memref<2x256xf32, #tpu.memory_space<vmem>>, vector<2x256xf32>
    %c0_1 = arith.constant 0 : index
    %c0_2 = arith.constant 0 : index
    %1 = vector.load %arg2[%c0_1, %c0_2] : memref<1x256xf32, #tpu.memory_space<vmem>>, vector<1x256xf32>
    %2 = vector.broadcast %1 : vector<1x256xf32> to vector<2x256xf32>
    %3 = arith.addf %0, %2 : vector<2x256xf32>
    %c0_3 = arith.constant 0 : index
    %c0_4 = arith.constant 0 : index
    %4 = vector.load %arg3[%c0_3, %c0_4] : memref<2x256xf32, #tpu.memory_space<vmem>>, vector<2x256xf32>
    tpu.vector_store %arg3[%c0_3, %c0_4], %3 {strides = array<i32>} : memref<2x256xf32, #tpu.memory_space<vmem>>, vector<2x256xf32>,
    return
  }
  func.func @transform_0(%arg0: i32) -> (i32, i32) {
    %c0_i32 = arith.constant 0 : i32
    %c0_i32_0 = arith.constant 0 : i32
    return %c0_i32, %arg0 : i32, i32
  }
  func.func @transform_1(%arg0: i32) -> (i32, i32) {
    %c0_i32 = arith.constant 0 : i32
    %c0_i32_0 = arith.constant 0 : i32
    return %c0_i32, %arg0 : i32, i32
  }
  func.func @transform_2(%arg0: i32) -> (i32, i32) {
    %c0_i32 = arith.constant 0 : i32
    %c0_i32_0 = arith.constant 0 : i32
    return %c0_i32, %arg0 : i32, i32
  }
}

</mosaic_0001>

<bundles_post_ra>
// kernel: tpu_custom_call.1
= control target key start
LH: loop header
LB: loop body
LE: loop exit
PB: predicated region body
PF: predicated region fallthrough
CT: control target
= control target key end

     0   :  { %7 = vsyncpa [#allocation3], 0  ;;  %s215_s0 = inlined_call_operand.hbm [shape: f32[2,256], index: 0, kind: input, shape index: {}]   ;;  %s216_s1 = inlined_call_operand.hbm [shape: f32[1,512], index: 1, kind: input, shape index: {}]   ;;  %s217_s2 = inlined_call_operand.hbm [shape: f32[2,256], index: 2, kind: output, shape index: {}]  }
   0x1   :  { %8 = vsyncpa [#allocation6], 0 }
   0x2   :  { %9 = vsyncpa [#allocation4], 0  ;;  %s150_s9 = smov [#allocation2]   ;;  %s151_s11 = smov [#allocation5]  }
   0x3   :  { %s16_s10 = sshll.u32 %s150_s9, 4  ;;  %s26_s12 = sshll.u32 %s151_s11, 4  ;;  %s17_s10 = int_to_ptr.vmem [resolvable:$true] %s16_s10  ;;  %s169_s12 = int_to_ptr.vmem [resolvable:$true] %s26_s12 }
   0x4   :  { %s78_s15 = scalar_lea.hbm %s215_s0, 64 }
   0x5   :  { %p79_p0 = scmp.ne.s32.totalorder %s215_s0, %s78_s15  ;;  %p82_p1 = scmp.lt.u32.totalorder %s78_s15, %s215_s0 }
   0x7   :  { %p84_p2 = pnand %p82_p1, %p79_p0 }
   0x9   :  { %87 = shalt.err (!%p84_p2)
}
   0xa   :  { %s88_s20 = scalar_lea.vmem %s17_s10, 64  ;;  %p93_p4 = scmp.lt.s32.totalorder %s17_s10, %s17_s10 }
   0xb   :  { %p89_p3 = scmp.ne.s32.totalorder %s17_s10, %s88_s20  ;;  %p94_p5 = scmp.lt.s32.totalorder %s88_s20, %s88_s20 }
   0xd   :  { %p95_p6 = por %p94_p5, %p93_p4 }
   0xf   :  { %p96_p7 = pnand %p95_p6, %p89_p3 }
  0x11   :  { %99 = shalt.err (!%p96_p7)
}
  0x12   :  { %19 = dma.hbm_to_vmem [thread:$0]  %s215_s0, 64, %s17_s10, [#allocation3]  }
  0x13   :  { %s100_s25 = scalar_lea.hbm %s216_s1, 32  ;;  %s102_s30 = scalar_lea.hbm %s216_s1, 64 }
  0x14   :  { %p101_p8 = scmp.ne.s32.totalorder %s216_s1, %s100_s25  ;;  %p103_p9 = scmp.lt.u32.totalorder %s102_s30, %s100_s25 }
  0x15   :  { %p104_p10 = scmp.lt.u32.totalorder %s100_s25, %s216_s1 }
  0x17   :  { %p105_p11 = por %p104_p10, %p103_p9 }
  0x19   :  { %p106_p12 = pnand %p105_p11, %p101_p8 }
  0x1b   :  { %109 = shalt.err (!%p106_p12)
}
  0x1c   :  { %s110_s0 = scalar_lea.vmem %s169_s12, 32  ;;  %p115_p0 = scmp.lt.s32.totalorder %s169_s12, %s169_s12 }
  0x1d   :  { %p111_p13 = scmp.ne.s32.totalorder %s169_s12, %s110_s0  ;;  %p116_p1 = scmp.lt.s32.totalorder %s110_s0, %s110_s0 }
  0x1f   :  { %p117_p2 = por %p116_p1, %p115_p0 }
  0x21   :  { %p118_p3 = pnand %p117_p2, %p111_p13 }
  0x23   :  { %121 = shalt.err (!%p118_p3)
}
  0x24   :  { %29 = dma.hbm_to_vmem [thread:$0]  %s216_s1, 32, %s169_s12, [#allocation6]  }
  0x25   :  { %144 = dma.done.wait [#allocation3], 64  }
  0x26   :  { %145 = vsyncadd [#allocation3], 4294967232 }
  0x27   :  { %146 = dma.done.wait [#allocation6], 32  }
  0x28   :  { %147 = vsyncadd [#allocation6], 4294967264  ;;  %v39_v0 = vlaneseq  ;;  %v152_v1 = vmov 1983009808   ;;  %v37_v7 = vld [vmem:[#allocation5] sm:$0x3] }
  0x29   :  { %v49_v2 = vunpack.c.l.s4 %v152_v1  ;;  %v36_v12 = vld [vmem:[#allocation2] sm:$0xf]  ;;  %s153_s7 = smov [#allocation7]  }
  0x2a   :  { %v40_v3 = vshrl.u32 %v39_v0, 7  ;;  %s64_s8 = sshll.u32 %s153_s7, 4  ;;  %s65_s8 = int_to_ptr.vmem [resolvable:$true] %s64_s8 }
  0x2b   :  { %v50_v6 = vunpack.c.0.s8 %v49_v2  ;;  %s122_s1 = scalar_lea.vmem %s65_s8, 64  ;;  %p127_p5 = scmp.lt.s32.totalorder %s65_s8, %s65_s8 }
  0x2c   :  { %v41_v4 = vsub.s32 0, %v40_v3  ;;  %v45_v5 = vsub.s32 1, %v40_v3  ;;  %p123_p4 = scmp.ne.s32.totalorder %s65_s8, %s122_s1  ;;  %p128_p6 = scmp.lt.s32.totalorder %s122_s1, %s122_s1 }
  0x2d   :  { %v53_v10 = vsub.s32 %v50_v6, %v40_v3 }
  0x2e   :  { %v42_v8 = vrot.slane %v37_v7, %v41_v4  ;;  %v46_v9 = vrot.slane %v37_v7, %v45_v5  ;;  %p129_p7 = por %p128_p6, %p127_p5 }
  0x30   :  { %v47_v11 = vcombine.low %v42_v8, %v46_v9  ;;  %p130_p8 = pnand %p129_p7, %p123_p4 }
  0x32   :  { %v54_v13 = vrot.slane %v47_v11, %v53_v10 }
  0x34   :  { %v56_v14 = vadd.f32 %v54_v13, %v36_v12 }
  0x36   :  { %57 = vst [vmem:[#allocation7] sm:$0xf] %v56_v14 }
  0x37   :  { %133 = shalt.err (!%p130_p8)
}
  0x38   :  { %s134_s11 = scalar_lea.hbm %s217_s2, 64 }
  0x39   :  { %p135_p9 = scmp.ne.s32.totalorder %s217_s2, %s134_s11  ;;  %p138_p10 = scmp.lt.u32.totalorder %s134_s11, %s217_s2 }
  0x3b   :  { %p140_p11 = pnand %p138_p10, %p135_p9 }
  0x3d   :  { %143 = shalt.err (!%p140_p11)
}
  0x3e   :  { %67 = dma.vmem_to_hbm [thread:$0]  %s65_s8, 64, %s217_s2, [#allocation4]  }
  0x3f   :  { %148 = dma.done.wait [#allocation4], 64  }
  0x40   :  { %149 = vsyncadd [#allocation4], 4294967232 }
  0x41   :  { %71 = vsyncpa [#allocation3], 1 }
  0x42   :  { %72 = vsyncpa [#allocation6], 1 }
  0x43   :  { %73 = vsyncpa [#allocation4], 1 }

</bundles_post_ra>
